<compile_context>
chip_gen: v5e
topology: v5e:2x2
jax: 0.10.0
libtpu: 0.0.40
codegen_flags: <defaults>
</compile_context>

<pallas_src>
import jax
import jax.numpy as jnp
from jax.experimental import pallas as pl
from jax.experimental.pallas import tpu as pltpu

LANES = 128        # lane width (last dim)
TM_MAX = 2048      # max rows per tile (2048*128*4B = 1 MiB per f32 block)
NUM_PARTS = 2      # leading "parallel" axis (sharded across TCs on v7x)


def _circ_dist_kernel(n_ref, yt_ref, yp_ref, o_ref, acc_ref):
    p = pl.program_id(0)               # parallel partial-sum index
    s = pl.program_id(1)               # reduction step within this partial
    nsteps = pl.num_programs(1)

    @pl.when(s == 0)
    def _():
        acc_ref[...] = jnp.zeros_like(acc_ref)

    tm, lanes = yt_ref.shape
    yt = yt_ref[...].astype(jnp.float32)
    yp = yp_ref[...].astype(jnp.float32)

    # Circular difference in "turns", wrapped to [-0.5, 0.5]; abs + scale to
    # degrees.  Equivalent (under abs) to rad2deg(atan2(sin(d), cos(d))).
    diff = yt - yp
    wrapped = diff - jnp.round(diff)
    val = 360.0 * jnp.abs(wrapped)

    # Mask out lane padding, the partial tail block, and phantom blocks of
    # the parallel split (their global element index is >= n -> contribute 0).
    blk = p * nsteps + s
    base = blk * (tm * lanes)
    row_id = jax.lax.broadcasted_iota(jnp.int32, (tm, lanes), 0)
    lane_id = jax.lax.broadcasted_iota(jnp.int32, (tm, lanes), 1)
    idx = base + row_id * lanes + lane_id
    val = jnp.where(idx < n_ref[0], val, 0.0)

    # Lane-parallel running sum (VPU adds); cross-lane reduce only at the end.
    acc_ref[...] += jnp.sum(val, axis=0, keepdims=True)

    @pl.when(s == nsteps - 1)
    def _():
        o_ref[...] = jnp.reshape(jnp.sum(acc_ref[...]), (1, 1, 1))


def circular_distance(y_true, y_pred):
    assert y_true.shape == y_pred.shape
    n = int(y_true.size)

    yt = jnp.ravel(y_true)
    yp = jnp.ravel(y_pred)

    # Pad only to a lane multiple (metadata-only reshape when already aligned);
    # the in-kernel index mask makes the pad contribute exactly zero.
    rem = n % LANES
    if rem:
        yt = jnp.pad(yt, (0, LANES - rem))
        yp = jnp.pad(yp, (0, LANES - rem))
    rows = (n + LANES - 1) // LANES
    yt2 = yt.reshape(rows, LANES)
    yp2 = yp.reshape(rows, LANES)

    tm = min(TM_MAX, rows)              # block is full-dim or a multiple of 8
    nblocks = pl.cdiv(rows, tm)
    num_parts = NUM_PARTS if nblocks >= NUM_PARTS else 1
    bpp = pl.cdiv(nblocks, num_parts)   # reduction steps per partial sum

    def in_map(p, s, n_sref):
        # Clamp phantom blocks of the parallel split onto a valid block; the
        # kernel's index mask zeroes their contribution.
        blk = p * bpp + s
        return (jnp.minimum(blk, nblocks - 1), 0)

    grid_spec = pltpu.PrefetchScalarGridSpec(
        num_scalar_prefetch=1,
        grid=(num_parts, bpp),
        in_specs=[
            pl.BlockSpec((tm, LANES), in_map),
            pl.BlockSpec((tm, LANES), in_map),
        ],
        out_specs=pl.BlockSpec((1, 1, 1), lambda p, s, n_sref: (p, 0, 0)),
        scratch_shapes=[pltpu.VMEM((1, LANES), jnp.float32)],
    )

    bytes_in = n * (y_true.dtype.itemsize + y_pred.dtype.itemsize)
    cost = pl.CostEstimate(
        flops=12 * n, transcendentals=0, bytes_accessed=bytes_in + 4 * num_parts
    )

    partials = pl.pallas_call(
        _circ_dist_kernel,
        out_shape=jax.ShapeDtypeStruct((num_parts, 1, 1), jnp.float32),
        grid_spec=grid_spec,
        compiler_params=pltpu.CompilerParams(
            dimension_semantics=("parallel", "arbitrary"),
        ),
        cost_estimate=cost,
    )(jnp.array([n], dtype=jnp.int32), yt2, yp2)

    return jnp.sum(partials)


def _reference(y_true, y_pred):
    yt_rad = jnp.deg2rad(y_true.astype(jnp.float32) * 360.0)
    yp_rad = jnp.deg2rad(y_pred.astype(jnp.float32) * 360.0)
    d = yt_rad - yp_rad
    diff = jnp.arctan2(jnp.sin(d), jnp.cos(d))
    return jnp.sum(jnp.abs(jnp.rad2deg(diff)))


if __name__ == "__main__":
    key = jax.random.PRNGKey(0)
    k1, k2, k3, k4, k5, k6 = jax.random.split(key, 6)

    # Main case (module-consistent small shape): single tile, grid (1, 1).
    shape = (2, 4, 16, 16)
    y_true = jax.random.uniform(k1, shape, dtype=jnp.float32)
    y_pred = jax.random.uniform(k2, shape, dtype=jnp.float32)
    out = jax.block_until_ready(circular_distance(y_true, y_pred))
    ref = _reference(y_true, y_pred)
    assert jnp.allclose(out, ref, rtol=1e-4, atol=1e-2), (out, ref)

    # Non-lane-aligned size: exercises the lane pad + in-kernel mask path.
    yt_s = jax.random.uniform(k3, (3, 7, 5), dtype=jnp.float32)
    yp_s = jax.random.uniform(k4, (3, 7, 5), dtype=jnp.float32)
    out_s = jax.block_until_ready(circular_distance(yt_s, yp_s))
    ref_s = _reference(yt_s, yp_s)
    assert jnp.allclose(out_s, ref_s, rtol=1e-4, atol=1e-2), (out_s, ref_s)

    # Multi-block case: odd block count -> phantom block on the parallel split.
    n_big = 5 * TM_MAX * LANES          # 5 row-blocks split across 2 partials
    yt_b = jax.random.uniform(k5, (n_big,), dtype=jnp.float32)
    yp_b = jax.random.uniform(k6, (n_big,), dtype=jnp.float32)
    out_b = jax.block_until_ready(circular_distance(yt_b, yp_b))
    ref_b = _reference(yt_b, yp_b)
    assert jnp.allclose(out_b, ref_b, rtol=1e-4, atol=1.0), (out_b, ref_b)

    print("KERNEL_OK")
</pallas_src>

<mosaic_0001>
module attributes {stable_mosaic.version = 11 : i64} {
  func.func @_circ_dist_kernel(%arg0: i32, %arg1: i32, %arg2: memref<1xi32, #tpu.memory_space<smem>>, %arg3: memref<16x128xf32, #tpu.memory_space<vmem>>, %arg4: memref<16x128xf32, #tpu.memory_space<vmem>>, %arg5: memref<1x1x1xf32, #tpu.memory_space<vmem>>, %arg6: memref<1x128xf32, #tpu.memory_space<vmem>>) attributes {dimension_semantics = [#tpu.dimension_semantics<parallel>, #tpu.dimension_semantics<arbitrary>], iteration_bounds = array<i64: 1, 1>, scalar_prefetch = 1 : i64, scratch_operands = 1 : i64, tpu.core_type = #tpu.core_type<tc>, window_params = [{transform_indices = @transform_0, window_bounds = array<i64: 16, 128>}, {transform_indices = @transform_1, window_bounds = array<i64: 16, 128>}, {transform_indices = @transform_2, window_bounds = array<i64: 1, 1, 1>}]} {
    %c0_i32 = arith.constant 0 : i32
    %0 = arith.cmpi eq, %arg1, %c0_i32 : i32
    %1 = arith.extui %0 : i1 to i32
    %c0_i32_0 = arith.constant 0 : i32
    %2 = arith.cmpi ne, %1, %c0_i32_0 : i32
    scf.if %2 {
      %cst_13 = arith.constant 0.000000e+00 : f32
      %34 = vector.broadcast %cst_13 : f32 to vector<1x128xf32>
      %c0_14 = arith.constant 0 : index
      %c0_15 = arith.constant 0 : index
      %35 = vector.load %arg6[%c0_14, %c0_15] : memref<1x128xf32, #tpu.memory_space<vmem>>, vector<1x128xf32>
      tpu.vector_store %arg6[%c0_14, %c0_15], %34 {strides = array<i32>} : memref<1x128xf32, #tpu.memory_space<vmem>>, vector<1x128xf32>,
    } else {
    }
    %c0 = arith.constant 0 : index
    %c0_1 = arith.constant 0 : index
    %3 = vector.load %arg3[%c0, %c0_1] : memref<16x128xf32, #tpu.memory_space<vmem>>, vector<16x128xf32>
    %c0_2 = arith.constant 0 : index
    %c0_3 = arith.constant 0 : index
    %4 = vector.load %arg4[%c0_2, %c0_3] : memref<16x128xf32, #tpu.memory_space<vmem>>, vector<16x128xf32>
    %5 = arith.subf %3, %4 : vector<16x128xf32>
    %6 = math.roundeven %5 : vector<16x128xf32>
    %7 = arith.subf %5, %6 : vector<16x128xf32>
    %8 = math.absf %7 : vector<16x128xf32>
    %cst = arith.constant 3.600000e+02 : f32
    %9 = vector.broadcast %cst : f32 to vector<16x128xf32>
    %10 = arith.mulf %9, %8 : vector<16x128xf32>
    %c1_i32 = arith.constant 1 : i32
    %11 = arith.muli %arg0, %c1_i32 : i32
    %12 = arith.addi %11, %arg1 : i32
    %c2048_i32 = arith.constant 2048 : i32
    %13 = arith.muli %12, %c2048_i32 : i32
    %14 = tpu.iota {dimensions = array<i32: 0>} : vector<16x128xi32>
    %15 = tpu.iota {dimensions = array<i32: 1>} : vector<16x128xi32>
    %c128_i32 = arith.constant 128 : i32
    %16 = vector.broadcast %c128_i32 : i32 to vector<16x128xi32>
    %17 = arith.muli %14, %16 : vector<16x128xi32>
    %18 = vector.broadcast %13 : i32 to vector<16x128xi32>
    %19 = arith.addi %18, %17 : vector<16x128xi32>
    %20 = arith.addi %19, %15 : vector<16x128xi32>
    %c0_4 = arith.constant 0 : index
    %21 = memref.load %arg2[%c0_4] : memref<1xi32, #tpu.memory_space<smem>>
    %22 = vector.broadcast %21 : i32 to vector<16x128xi32>
    %23 = arith.cmpi slt, %20, %22 : vector<16x128xi32>
    %cst_5 = arith.constant 0.000000e+00 : f32
    %24 = vector.broadcast %cst_5 : f32 to vector<16x128xf32>
    %25 = arith.select %23, %10, %24 : vector<16x128xi1>, vector<16x128xf32>
    %c0_6 = arith.constant 0 : index
    %c0_7 = arith.constant 0 : index
    %26 = vector.load %arg6[%c0_6, %c0_7] : memref<1x128xf32, #tpu.memory_space<vmem>>, vector<1x128xf32>
    %cst_8 = arith.constant dense<0.000000e+00> : vector<128xf32>
    %27 = vector.multi_reduction <add>, %25, %cst_8 [0] : vector<16x128xf32> to vector<128xf32>
    %28 = vector.shape_cast %27 : vector<128xf32> to vector<1x128xf32>
    %29 = arith.addf %26, %28 : vector<1x128xf32>
    %c0_9 = arith.constant 0 : index
    %c0_10 = arith.constant 0 : index
    %30 = vector.load %arg6[%c0_9, %c0_10] : memref<1x128xf32, #tpu.memory_space<vmem>>, vector<1x128xf32>
    tpu.vector_store %arg6[%c0_9, %c0_10], %29 {strides = array<i32>} : memref<1x128xf32, #tpu.memory_space<vmem>>, vector<1x128xf32>,
    %c0_i32_11 = arith.constant 0 : i32
    %31 = arith.cmpi eq, %arg1, %c0_i32_11 : i32
    %32 = arith.extui %31 : i1 to i32
    %c0_i32_12 = arith.constant 0 : i32
    %33 = arith.cmpi ne, %32, %c0_i32_12 : i32
    scf.if %33 {
      %c0_13 = arith.constant 0 : index
      %c0_14 = arith.constant 0 : index
      %34 = vector.load %arg6[%c0_13, %c0_14] : memref<1x128xf32, #tpu.memory_space<vmem>>, vector<1x128xf32>
      %35 = vector.shape_cast %34 : vector<1x128xf32> to vector<1x1x128xf32>
      %cst_15 = arith.constant dense<0.000000e+00> : vector<1xf32>
      %36 = vector.multi_reduction <add>, %35, %cst_15 [1, 2] : vector<1x1x128xf32> to vector<1xf32>
      %37 = vector.shape_cast %36 : vector<1xf32> to vector<1x1x1xf32>
      %38 = vector.extract %37[0, 0, 0] : f32 from vector<1x1x1xf32>
      %39 = vector.broadcast %38 : f32 to vector<1x1x1xf32>
      %c0_16 = arith.constant 0 : index
      %c0_17 = arith.constant 0 : index
      %c0_18 = arith.constant 0 : index
      %40 = vector.load %arg5[%c0_16, %c0_17, %c0_18] : memref<1x1x1xf32, #tpu.memory_space<vmem>>, vector<1x1x1xf32>
      tpu.vector_store %arg5[%c0_16, %c0_17, %c0_18], %39 {strides = array<i32>} : memref<1x1x1xf32, #tpu.memory_space<vmem>>, vector<1x1x1xf32>,
    } else {
    }
    return
  }
  func.func @transform_0(%arg0: i32, %arg1: i32, %arg2: memref<1xi32, #tpu.memory_space<smem>>) -> (i32, i32) {
    %c1_i32 = arith.constant 1 : i32
    %0 = arith.muli %arg0, %c1_i32 : i32
    %1 = arith.addi %0, %arg1 : i32
    %c0_i32 = arith.constant 0 : i32
    %2 = arith.minsi %1, %c0_i32 : i32
    %c0_i32_0 = arith.constant 0 : i32
    %c0_i32_1 = arith.constant 0 : i32
    return %2, %c0_i32_0 : i32, i32
  }
  func.func @transform_1(%arg0: i32, %arg1: i32, %arg2: memref<1xi32, #tpu.memory_space<smem>>) -> (i32, i32) {
    %c1_i32 = arith.constant 1 : i32
    %0 = arith.muli %arg0, %c1_i32 : i32
    %1 = arith.addi %0, %arg1 : i32
    %c0_i32 = arith.constant 0 : i32
    %2 = arith.minsi %1, %c0_i32 : i32
    %c0_i32_0 = arith.constant 0 : i32
    %c0_i32_1 = arith.constant 0 : i32
    return %2, %c0_i32_0 : i32, i32
  }
  func.func @transform_2(%arg0: i32, %arg1: i32, %arg2: memref<1xi32, #tpu.memory_space<smem>>) -> (i32, i32, i32) {
    %c0_i32 = arith.constant 0 : i32
    %c0_i32_0 = arith.constant 0 : i32
    %c0_i32_1 = arith.constant 0 : i32
    return %arg0, %c0_i32, %c0_i32_0 : i32, i32, i32
  }
}

</mosaic_0001>

<bundles_post_ra>
// kernel: tpu_custom_call.1
= control target key start
LH: loop header
LB: loop body
LE: loop exit
PB: predicated region body
PF: predicated region fallthrough
CT: control target
= control target key end

     0   :  { %9 = vsyncpa [#allocation6], 0  ;;  %s295_s0 = inlined_call_operand.<no memory space> [shape: s32[1], index: 0, kind: input, shape index: {}]   ;;  %s296_s1 = inlined_call_operand.hbm [shape: f32[16,128], index: 1, kind: input, shape index: {}]   ;;  %s297_s2 = inlined_call_operand.hbm [shape: f32[16,128], index: 2, kind: input, shape index: {}]   ;;  %s298_s3 = inlined_call_operand.hbm [shape: f32[1,1,1], index: 3, kind: output, shape index: {}]  }
   0x1   :  { %10 = vsyncpa [#allocation9], 0 }
   0x2   :  { %11 = vsyncpa [#allocation7], 0  ;;  %s22_s14 = sshll.u32 %s296_s1, 4  ;;  %s257_s15 = smov [#allocation5]   ;;  %s23_s14 = int_to_ptr.hbm [resolvable:$true] %s22_s14 }
   0x3   :  { %s24_s16 = sshll.u32 %s257_s15, 4  ;;  %s41_s19 = sshll.u32 %s297_s2, 4  ;;  %s25_s16 = int_to_ptr.vmem [resolvable:$true] %s24_s16  ;;  %s42_s19 = int_to_ptr.hbm [resolvable:$true] %s41_s19 }
   0x4   :  { %s258_s20 = smov 128   ;;  %s259_s21 = smov 8  }
   0x5   :  { %30 = dma.hbm_to_vmem [thread:$0]  %s23_s14, 256, %s25_s16, [#allocation6], %s258_s20, %s258_s20, %s259_s21  }
   0x6   :  { %s260_s22 = smov [#allocation8]  }
   0x7   :  { %s43_s23 = sshll.u32 %s260_s22, 4  ;;  %s44_s23 = int_to_ptr.vmem [resolvable:$true] %s43_s23 }
   0x8   :  { %49 = dma.hbm_to_vmem [thread:$0]  %s42_s19, 256, %s44_s23, [#allocation9], %s258_s20, %s258_s20, %s259_s21  }
   0x9   :  { %251 = dma.done.wait [#allocation6], 256  }
   0xa   :  { %252 = vsyncadd [#allocation6], 4294967040 }
   0xb   :  { %253 = dma.done.wait [#allocation9], 256  }
   0xc   :  { %254 = vsyncadd [#allocation9], 4294967040  ;;  %v261_v0 = vmov 0.0   ;;  %v87_v1 = vlaneseq  ;;  %v71_v2 = vld [vmem:[#allocation5] sm:$0xff]  ;;  %v72_v3 = vld [vmem:[#allocation5 + $0x8] sm:$0xff]  ;;  %v100_v30 = vstv %s295_s0  ;;  %vm119_vm4 = vcmask 1040384  }
   0xd   :  { %70 = vst [vmem:[#allocation2] sm:$0x1] %v261_v0  ;;  %v73_v4 = vld [vmem:[#allocation8] sm:$0xff]  ;;  %v74_v6 = vld [vmem:[#allocation8 + $0x8] sm:$0xff]  ;;  %s262_s0 = smov [#allocation10]   ;;  %s140_s27 = sshll.u32 %s298_s3, 4  ;;  %s141_s27 = int_to_ptr.hbm [resolvable:$true] %s140_s27 }
   0xe   :  { %v88_v5 = vshrl.u32 %v87_v1, 7  ;;  %v75_v7 = vsub.f32 %v71_v2, %v73_v4  ;;  %v76_v8 = vsub.f32 %v72_v3, %v74_v6  ;;  %v91_v19 = vand.u32 127, %v87_v1  ;;  %s138_s24 = sshll.u32 %s262_s0, 4  ;;  %s139_s24 = int_to_ptr.vmem [resolvable:$true] %s138_s24 }
   0xf   :  { %vm131_vm5 = vcmask 0  }
  0x10   :  { %v157_v9 = vcvt.f32.s32 %v75_v7  ;;  %v155_v10 = vand.u32 2147483647, %v75_v7  ;;  %v165_v11 = vcvt.f32.s32 %v76_v8  ;;  %v89_v12 = vadd.s32 8, %v88_v5 }
  0x11   :  { %v160_v14 = vand.u32 2147483648, %v75_v7  ;;  %v163_v15 = vand.u32 2147483647, %v76_v8  ;;  %v168_v17 = vand.u32 2147483648, %v76_v8  ;;  %v92_v20 = vmul.u32 128, %v88_v5 }
  0x12   :  { %v158_v13 = vcvt.s32.f32 %v157_v9  ;;  %v166_v16 = vcvt.s32.f32 %v165_v11  ;;  %vm156_vm0 = vcmp.lt.f32.partialorder %v155_v10, 8388608.0  ;;  %v93_v22 = vmul.u32 128, %v89_v12 }
  0x13   :  { %vm164_vm1 = vcmp.lt.f32.partialorder %v163_v15, 8388608.0  ;;  %v97_v26 = vadd.s32 %v92_v20, %v91_v19 }
  0x14   :  { %v159_v18 = vand.u32 2147483647, %v158_v13  ;;  %v167_v21 = vand.u32 2147483647, %v166_v16  ;;  %v98_v29 = vadd.s32 %v93_v22, %v91_v19  ;;  %v105_v44 = vld [vmem:[#allocation2] sm:$0x1] }
  0x15   :  { %vm101_vm2 = vcmp.lt.s32.totalorder %v97_v26, %v100_v30 }
  0x16   :  { %v161_v23 = vor.u32 %v160_v14, %v159_v18  ;;  %v169_v24 = vor.u32 %v168_v17, %v167_v21  ;;  %vm102_vm3 = vcmp.lt.s32.totalorder %v98_v29, %v100_v30 }
  0x18   :  { %v162_v25 = vsel %vm156_vm0, %v161_v23, %v75_v7  ;;  %v170_v27 = vsel %vm164_vm1, %v169_v24, %v76_v8 }
  0x19   :  { %v79_v28 = vsub.f32 %v75_v7, %v162_v25  ;;  %v80_v31 = vsub.f32 %v76_v8, %v170_v27 }
  0x1b   :  { %v81_v32 = vand.u32 2147483647, %v79_v28  ;;  %v82_v33 = vand.u32 2147483647, %v80_v31 }
  0x1d   :  { %v83_v34 = vmul.f32 360.0, %v81_v32  ;;  %v84_v35 = vmul.f32 360.0, %v82_v33 }
  0x1f   :  { %v103_v36 = vsel %vm101_vm2, %v83_v34, 0.0  ;;  %v104_v37 = vsel %vm102_vm3, %v84_v35, 0.0 }
  0x20   :  { %v106_v38 = vadd.f32 %v104_v37, %v103_v36 }
  0x22   :  { %v107_v39 = vrot.slane %v106_v38, 4 }
  0x24   :  { %v108_v40 = vadd.f32 %v107_v39, %v106_v38 }
  0x26   :  { %v109_v41 = vrot.slane %v108_v40, 2 }
  0x28   :  { %v110_v42 = vadd.f32 %v109_v41, %v108_v40 }
  0x2a   :  { %v111_v43 = vrot.slane %v110_v42, 1 }
  0x2c   :  { %v112_v45 = vadd.f32 %v111_v43, %v110_v42 }
  0x2e   :  { %v113_v46 = vadd.f32 %v112_v45, %v105_v44 }
  0x30   :  { %114 = vst [vmem:[#allocation2] sm:$0x1] %v113_v46 }
  0x37   :  { %v118_v47 = vld [vmem:[#allocation2] sm:$0x1] }
  0x38   :  { %v120_v48 = vsel %vm119_vm4, %v118_v47, 0.0 }
  0x39   :  { %121 = vadd.xlane.f32.xlu0 %v120_v48 }
  0xac   :  { %v122_v49 = vpop.xlane.xlu0 %121 }
  0xad   :  { %v123_v50 = vrot.slane %v122_v49, 4 }
  0xaf   :  { %v124_v51 = vadd.f32 %v123_v50, %v122_v49 }
  0xb1   :  { %v125_v52 = vrot.slane %v124_v51, 2 }
  0xb3   :  { %v126_v53 = vadd.f32 %v125_v52, %v124_v51 }
  0xb5   :  { %v127_v54 = vrot.slane %v126_v53, 1 }
  0xb7   :  { %v128_v55 = vadd.f32 %v127_v54, %v126_v53 }
  0xb9   :  { %171 = vpush %v128_v55 }
  0xea   :  { %s172_s28 = spop %171 }
  0xeb   :  { %v130_v56 = vstv %s172_s28 }
  0xec   :  { %132 = vst.msk [vmem:[#allocation10] sm:$0x1] %vm131_vm5, %v130_v56 }
  0xed   :  { %143 = dma.vmem_to_hbm [thread:$0]  %s139_s24, 16, %s141_s27, [#allocation7]  }
  0xee   :  { %255 = dma.done.wait [#allocation7], 16  }
  0xef   :  { %256 = vsyncadd [#allocation7], 4294967280 }
  0xf0   :  { %148 = vsyncpa [#allocation6], 1 }
  0xf1   :  { %149 = vsyncpa [#allocation9], 1 }
  0xf2   :  { %150 = vsyncpa [#allocation7], 1 }

</bundles_post_ra>
